<compile_context>
chip_gen: v7x
topology: tpu7x:2x2x1
jax: 0.10.0
libtpu: 0.0.40
codegen_flags: <defaults>
</compile_context>

<pallas_src>
import functools
import math

import jax
import jax.numpy as jnp
import numpy as np
from jax.experimental import pallas as pl
from jax.experimental.pallas import tpu as pltpu


def _smooth_ce_kernel(feat_ref, tgt_ref, loss_ref, *,
                      coef_t, coef_o, ent, n_class, n_rows, tile_n):
    """One row-tile: per-row label-smoothed CE written to loss_ref (tile_n, 1)."""
    f_nat = feat_ref[...]                                  # (tile_n, C) native dtype

    # Row max on the native-dtype block (max is exact in bf16), then a single
    # fused cast+subtract pass producing d = f32(f) - m  (d <= 0 for real rows).
    m = jnp.max(f_nat, axis=1, keepdims=True).astype(jnp.float32)   # (tile_n, 1)
    d = f_nat.astype(jnp.float32) - m                               # (tile_n, C)

    # log-sum-exp (m cancels out of every term below, so lse is never formed).
    s = jnp.sum(jnp.exp(d), axis=1, keepdims=True)          # (tile_n, 1)
    log_s = jnp.log(s)

    # Gather d[row, target[row]] via lane-iota compare (pure VPU work).
    tgt = tgt_ref[...]                                       # (tile_n, 1) int32
    col = jax.lax.broadcasted_iota(jnp.int32, d.shape, 1)
    d_t = jnp.sum(jnp.where(col == tgt, d, jnp.float32(0.0)),
                  axis=1, keepdims=True)

    loss_rows = jnp.float32(ent) - jnp.float32(coef_t) * (d_t - log_s)
    if coef_o != 0.0:                                        # eps == 0 specialization
        sum_d = jnp.sum(d, axis=1, keepdims=True)
        loss_rows = loss_rows - jnp.float32(coef_o) * (
            sum_d - jnp.float32(n_class) * log_s)

    # Rows past N exist only in the last, partial block.  Their output writes
    # are dropped by the pipeline anyway; masking keeps garbage-driven Inf/NaN
    # out of the store path.
    if n_rows % tile_n != 0:
        i = pl.program_id(0)
        row = jax.lax.broadcasted_iota(jnp.int32, (tile_n, 1), 0) + i * tile_n
        loss_rows = jnp.where(row < n_rows, loss_rows, jnp.float32(0.0))

    loss_ref[...] = loss_rows


def smooth_label_cross_entropy(feature, target, eps=0.1):
    """feature: (N, C) float (any dtype); target: (N,) int. Returns scalar f32 loss."""
    n, c = feature.shape
    assert n > 0 and c > 1

    itemsize = jnp.dtype(feature.dtype).itemsize
    # sublane granularity of the feature dtype (f32 -> 8, bf16 -> 16, int8 -> 32)
    gran = max(8, 32 // itemsize)

    # VMEM bytes per tile row, counting everything that is actually live:
    #   feature block (native dtype, double-buffered)      : 2 * C * itemsize
    #   f32 compiler temporaries (d, exp(d), gather select) : 3 * C * 4
    #   lane-padded (row,1) target + output, double-buffered: 4 * 128 * 4
    per_row_bytes = 2 * c * itemsize + 12 * c + 2048
    budget_bytes = 10 * 1024 * 1024          # under v5e's 16 MiB scoped default
    tile_n = max(gran, (budget_bytes // per_row_bytes) // gran * gran)

    # Keep >= ~4 grid steps when N allows -> both TensorCores get work on v7x.
    min_steps = 4
    cap = ((n + min_steps - 1) // min_steps + gran - 1) // gran * gran
    tile_n = max(gran, min(tile_n, cap, 2048))

    grid = pl.cdiv(n, tile_n)                 # no host-side padding of the feature

    tgt = target.astype(jnp.int32).reshape(n, 1)

    # closed-form sum_c smooth*log(smooth) and the two mixing coefficients
    if eps > 0.0:
        coef_o = eps / (c - 1)
        ent = (1.0 - eps) * math.log(1.0 - eps) + eps * math.log(eps / (c - 1))
    else:
        coef_o = 0.0
        ent = 0.0
    coef_t = (1.0 - eps) - coef_o

    kernel = functools.partial(
        _smooth_ce_kernel,
        coef_t=float(coef_t), coef_o=float(coef_o), ent=float(ent),
        n_class=c, n_rows=n, tile_n=tile_n)

    per_row_loss = pl.pallas_call(
        kernel,
        out_shape=jax.ShapeDtypeStruct((n, 1), jnp.float32),
        grid_spec=pltpu.PrefetchScalarGridSpec(
            num_scalar_prefetch=0,
            grid=(grid,),
            in_specs=[
                pl.BlockSpec((tile_n, c), lambda i: (i, 0)),
                pl.BlockSpec((tile_n, 1), lambda i: (i, 0)),
            ],
            out_specs=pl.BlockSpec((tile_n, 1), lambda i: (i, 0)),
        ),
        compiler_params=pltpu.CompilerParams(
            dimension_semantics=("parallel",),        # independent row blocks
            vmem_limit_bytes=32 * 1024 * 1024,        # headroom over the budget
        ),
    )(feature, tgt)

    # Output array has exactly N rows (OOB writes of the last block are dropped),
    # so the mean needs no masking.
    return jnp.sum(per_row_loss) / jnp.float32(n)


def _reference(feature, target, eps=0.1):
    f = feature.astype(jnp.float32)
    n, c = f.shape
    one_hot = jax.nn.one_hot(target, c, dtype=jnp.float32)
    smooth = one_hot * (1.0 - eps) + (1.0 - one_hot) * (eps / (c - 1))
    log_prb = jax.nn.log_softmax(f, axis=1)
    kl = smooth * (jnp.log(smooth) - log_prb)
    return kl.sum(axis=1).mean()


if __name__ == "__main__":
    key = jax.random.PRNGKey(0)
    k1, k2, k3, k4 = jax.random.split(key, 4)

    # Case 1: f32, small shapes matching the original demo (single tile).
    N, C = 8, 32
    feature = jax.random.normal(k1, (N, C), dtype=jnp.float32)
    target = jax.random.randint(k2, (N,), 0, C, dtype=jnp.int32)
    loss = jax.block_until_ready(smooth_label_cross_entropy(feature, target, eps=0.1))
    ref = _reference(feature, target, eps=0.1)
    np.testing.assert_allclose(np.asarray(loss), np.asarray(ref), rtol=1e-5, atol=1e-5)

    # Case 2: bf16 input (native-dtype DMA path), N not a tile multiple:
    # exercises the un-padded partial last block + in-kernel row mask.
    N2, C2 = 20, 160
    feature2 = jax.random.normal(k3, (N2, C2), dtype=jnp.bfloat16)
    target2 = jax.random.randint(k4, (N2,), 0, C2, dtype=jnp.int32)
    loss2 = jax.block_until_ready(smooth_label_cross_entropy(feature2, target2, eps=0.2))
    ref2 = _reference(feature2, target2, eps=0.2)
    np.testing.assert_allclose(np.asarray(loss2), np.asarray(ref2), rtol=1e-3, atol=1e-3)

    print("KERNEL_OK")
</pallas_src>

<mosaic_0001>
module attributes {stable_mosaic.version = 11 : i64} {
  func.func @_smooth_ce_kernel(%arg0: i32, %arg1: memref<8x32xf32, #tpu.memory_space<vmem>>, %arg2: memref<8x1xi32, #tpu.memory_space<vmem>>, %arg3: memref<8x1xf32, #tpu.memory_space<vmem>>) attributes {dimension_semantics = [#tpu.dimension_semantics<parallel>], iteration_bounds = array<i64: 1>, scalar_prefetch = 0 : i64, scratch_operands = 0 : i64, tpu.core_type = #tpu.core_type<tc>, window_params = [{transform_indices = @transform_0, window_bounds = array<i64: 8, 32>}, {transform_indices = @transform_1, window_bounds = array<i64: 8, 1>}, {transform_indices = @transform_2, window_bounds = array<i64: 8, 1>}]} {
    %c0 = arith.constant 0 : index
    %c0_0 = arith.constant 0 : index
    %0 = vector.load %arg1[%c0, %c0_0] : memref<8x32xf32, #tpu.memory_space<vmem>>, vector<8x32xf32>
    %cst = arith.constant dense<0xFF800000> : vector<8xf32>
    %1 = vector.multi_reduction <maximumf>, %0, %cst [1] : vector<8x32xf32> to vector<8xf32>
    %2 = vector.shape_cast %1 : vector<8xf32> to vector<8x1xf32>
    %3 = vector.broadcast %2 : vector<8x1xf32> to vector<8x32xf32>
    %4 = arith.subf %0, %3 : vector<8x32xf32>
    %5 = math.exp %4 : vector<8x32xf32>
    %cst_1 = arith.constant dense<0.000000e+00> : vector<8xf32>
    %6 = vector.multi_reduction <add>, %5, %cst_1 [1] : vector<8x32xf32> to vector<8xf32>
    %7 = vector.shape_cast %6 : vector<8xf32> to vector<8x1xf32>
    %8 = math.log %7 : vector<8x1xf32>
    %c0_2 = arith.constant 0 : index
    %c0_3 = arith.constant 0 : index
    %9 = vector.load %arg2[%c0_2, %c0_3] : memref<8x1xi32, #tpu.memory_space<vmem>>, vector<8x1xi32>
    %10 = tpu.iota {dimensions = array<i32: 1>} : vector<8x32xi32>
    %11 = vector.broadcast %9 : vector<8x1xi32> to vector<8x32xi32>
    %12 = arith.cmpi eq, %10, %11 : vector<8x32xi32>
    %cst_4 = arith.constant 0.000000e+00 : f32
    %13 = vector.broadcast %cst_4 : f32 to vector<8x32xf32>
    %14 = arith.select %12, %4, %13 : vector<8x32xi1>, vector<8x32xf32>
    %cst_5 = arith.constant dense<0.000000e+00> : vector<8xf32>
    %15 = vector.multi_reduction <add>, %14, %cst_5 [1] : vector<8x32xf32> to vector<8xf32>
    %16 = vector.shape_cast %15 : vector<8xf32> to vector<8x1xf32>
    %17 = arith.subf %16, %8 : vector<8x1xf32>
    %cst_6 = arith.constant 0.896774172 : f32
    %18 = vector.broadcast %cst_6 : f32 to vector<8x1xf32>
    %19 = arith.mulf %18, %17 : vector<8x1xf32>
    %cst_7 = arith.constant -0.668481708 : f32
    %20 = vector.broadcast %cst_7 : f32 to vector<8x1xf32>
    %21 = arith.subf %20, %19 : vector<8x1xf32>
    %cst_8 = arith.constant dense<0.000000e+00> : vector<8xf32>
    %22 = vector.multi_reduction <add>, %4, %cst_8 [1] : vector<8x32xf32> to vector<8xf32>
    %23 = vector.shape_cast %22 : vector<8xf32> to vector<8x1xf32>
    %cst_9 = arith.constant 3.200000e+01 : f32
    %24 = vector.broadcast %cst_9 : f32 to vector<8x1xf32>
    %25 = arith.mulf %24, %8 : vector<8x1xf32>
    %26 = arith.subf %23, %25 : vector<8x1xf32>
    %cst_10 = arith.constant 0.0032258064 : f32
    %27 = vector.broadcast %cst_10 : f32 to vector<8x1xf32>
    %28 = arith.mulf %27, %26 : vector<8x1xf32>
    %29 = arith.subf %21, %28 : vector<8x1xf32>
    %c0_11 = arith.constant 0 : index
    %c0_12 = arith.constant 0 : index
    %30 = vector.load %arg3[%c0_11, %c0_12] : memref<8x1xf32, #tpu.memory_space<vmem>>, vector<8x1xf32>
    tpu.vector_store %arg3[%c0_11, %c0_12], %29 {strides = array<i32>} : memref<8x1xf32, #tpu.memory_space<vmem>>, vector<8x1xf32>,
    return
  }
  func.func @transform_0(%arg0: i32) -> (i32, i32) {
    %c0_i32 = arith.constant 0 : i32
    %c0_i32_0 = arith.constant 0 : i32
    return %arg0, %c0_i32 : i32, i32
  }
  func.func @transform_1(%arg0: i32) -> (i32, i32) {
    %c0_i32 = arith.constant 0 : i32
    %c0_i32_0 = arith.constant 0 : i32
    return %arg0, %c0_i32 : i32, i32
  }
  func.func @transform_2(%arg0: i32) -> (i32, i32) {
    %c0_i32 = arith.constant 0 : i32
    %c0_i32_0 = arith.constant 0 : i32
    return %arg0, %c0_i32 : i32, i32
  }
}

</mosaic_0001>

<bundles_post_ra>
// kernel: tpu_custom_call.1
= control target key start
LH: loop header
LB: loop body
LE: loop exit
PB: predicated region body
PF: predicated region fallthrough
CT: control target
= control target key end

     0   :  { %vm12_vm0 = vcmask 261120   ;;  %v57_v1 = vmov 0   ;;  %v25_v7 = vlaneseq  ;;  %vm45_vm2 = vcmask 7168   ;;  %s86_s0 = inlined_call_operand.vmem [shape: f32[8,32], index: 0, kind: input, shape index: {}]   ;;  %s87_s1 = inlined_call_operand.vmem [shape: s32[8,1], index: 1, kind: input, shape index: {}]   ;;  %s88_s2 = inlined_call_operand.vmem [shape: f32[8,1], index: 2, kind: output, shape index: {}]  }
   0x1   :  { %v11_v0 = vld [vmem:[%s86_s0] sm:$0xff]  ;;  %52 = vset.pattern.permute.xlu0 %v57_v1 }
   0x2   :  { %v13_v2 = vsel %vm12_vm0, %v11_v0, -inf  ;;  %v24_v3 = vld [vmem:[%s87_s1] sm:$0xff]  ;;  %v26_v8 = vand.u32 127, %v25_v7 }
   0x3   :  { %14 = vmax.xlane.f32.xlu0 %v13_v2 }
  0x19   :  { %28 = vperm.xlu0 %52, %v24_v3  }
  0x90   :  { %v15_v4 = vpop.xlane.xlu0 %14 }
  0x91   :  { %v16_v5 = vsub.f32 %v11_v0, %v15_v4 }
  0x93   :  { %v17_v6 = vmul.f32 1.442695, %v16_v5  ;;  %v38_v14 = vsel %vm12_vm0, %v16_v5, 0.0 }
  0x95   :  { %53 = vpow2.f32 %v17_v6 }
  0x98   :  { %v29_v9 = vpop.permute.xlu0 %28 }
  0x99   :  { %vm30_vm1 = vcmp.eq.s32.totalorder %v26_v8, %v29_v9 }
  0x9a   :  { %v31_v12 = vsel %vm30_vm1, %v16_v5, 0.0 }
  0x9b   :  { %v32_v13 = vsel %vm12_vm0, %v31_v12, 0.0 }
  0x9f   :  { %v54_v10 = vpop.eup %53 }
  0xa0   :  { %v19_v11 = vsel %vm12_vm0, %v54_v10, 0.0 }
  0xa1   :  { %20 = vadd.xlane.f32.xlu1 %v19_v11 }
  0xa5   :  { %33 = vadd.xlane.f32.xlu1 %v32_v13 }
  0xa9   :  { %39 = vadd.xlane.f32.xlu1 %v38_v14 }
 0x12e   :  { %v21_v15 = vpop.xlane.xlu1 %20 }
 0x12f   :  { %55 = vlog2.f32 %v21_v15 }
 0x132   :  { %v34_v16 = vpop.xlane.xlu1 %33 }
 0x136   :  { %v40_v21 = vpop.xlane.xlu1 %39 }
 0x139   :  { %v56_v17 = vpop.eup %55 }
 0x13a   :  { %v23_v18 = vmul.f32 0.6931472, %v56_v17 }
 0x13c   :  { %v35_v19 = vsub.f32 %v34_v16, %v23_v18  ;;  %v41_v20 = vmul.f32 32.0, %v23_v18 }
 0x13e   :  { %v36_v22 = vmul.f32 0.8967742, %v35_v19  ;;  %v42_v23 = vsub.f32 %v40_v21, %v41_v20 }
 0x140   :  { %v37_v24 = vsub.f32 -0.6684817, %v36_v22  ;;  %v43_v25 = vmul.f32 0.0032258064, %v42_v23 }
 0x142   :  { %v44_v26 = vsub.f32 %v37_v24, %v43_v25 }
 0x144   :  { %46 = vst.msk [vmem:[%s88_s2] sm:$0xff] %vm45_vm2, %v44_v26 }

</bundles_post_ra>
